<compile_context>
chip_gen: v6e
topology: v6e:2x2x1
jax: 0.10.0
libtpu: 0.0.40
codegen_flags: <defaults>
</compile_context>

<pallas_src>
import jax
import jax.numpy as jnp
from jax.experimental import pallas as pl
from jax.experimental.pallas import tpu as pltpu


def _logz_kernel(logz_ref, out_ref):
    # Scalar copy on the scalar unit: 1-D SMEM -> 1-D SMEM, no vector work.
    out_ref[0] = logz_ref[0]


def logz_forward_pallas(logz_param: jax.Array) -> jax.Array:
    """Forward pass of LogZ as a Pallas kernel (scalar kept in 1-D SMEM).

    Only for the case where a kernel launch is explicitly mandated; otherwise
    use `logz_forward`.

    logz_param: 0-d float32 array (the nn.Parameter).
    returns:    0-d float32 array.
    """
    logz_1d = logz_param.reshape(1)  # 1-D SMEM ref: pads to 4 bytes, not 4 KiB.
    out = pl.pallas_call(
        _logz_kernel,
        out_shape=jax.ShapeDtypeStruct((1,), logz_1d.dtype),
        in_specs=[pl.BlockSpec(memory_space=pltpu.SMEM)],
        out_specs=pl.BlockSpec(memory_space=pltpu.SMEM),
        input_output_aliases={0: 0},  # output == input, alias away the writeback
        cost_estimate=pl.CostEstimate(flops=0, transcendentals=0, bytes_accessed=8),
    )(logz_1d)
    return out.reshape(())


def logz_forward(logz_param: jax.Array, *, force_pallas_kernel: bool = False) -> jax.Array:
    """Production forward: identity on the parameter (no kernel launch).

    Set force_pallas_kernel=True only if a Pallas launch is explicitly required.
    """
    if force_pallas_kernel:
        return logz_forward_pallas(logz_param)
    return logz_param


if __name__ == "__main__":
    # Deterministic parameter init, mirroring nn.Parameter(torch.tensor(0.0)).
    # (PRNGKey(0) kept for harness shape-consistency; __init__ sets logZ = 0.0.)
    _ = jax.random.PRNGKey(0)
    logz = jnp.asarray(0.0, dtype=jnp.float32)

    # Zero-overhead path (the production path): forward() is just the parameter.
    result = logz_forward(logz)
    jax.block_until_ready(result)
    assert result.shape == ()
    assert result.dtype == jnp.float32
    assert float(result) == 0.0

    # Guarded Pallas-kernel path (only if a launch is mandated): scalar in SMEM.
    result_k = logz_forward(logz, force_pallas_kernel=True)
    jax.block_until_ready(result_k)
    assert result_k.shape == ()
    assert result_k.dtype == jnp.float32
    assert float(result_k) == float(result) == 0.0

    print("KERNEL_OK")
</pallas_src>

<mosaic_0001>
module attributes {stable_mosaic.version = 11 : i64} {
  func.func @_logz_kernel(%arg0: memref<1xf32, #tpu.memory_space<smem>>, %arg1: memref<1xf32, #tpu.memory_space<smem>>) attributes {dimension_semantics = [], scalar_prefetch = 0 : i64, scratch_operands = 0 : i64, tpu.core_type = #tpu.core_type<tc>} {
    %c0 = arith.constant 0 : index
    %0 = memref.load %arg0[%c0] : memref<1xf32, #tpu.memory_space<smem>>
    %c0_0 = arith.constant 0 : index
    %1 = memref.load %arg1[%c0_0] : memref<1xf32, #tpu.memory_space<smem>>
    memref.store %0, %arg1[%c0_0] : memref<1xf32, #tpu.memory_space<smem>>
    return
  }
}

</mosaic_0001>

<bundles_post_ra>
// kernel: tpu_custom_call.1
= control target key start
LH: loop header
LB: loop body
LE: loop exit
PB: predicated region body
PF: predicated region fallthrough
CT: control target
= control target key end

     0   :  { %7 = vsyncpa [#allocation4], 0  ;;  %s37_s8 = smov [#allocation3]   ;;  %s54_s0 = inlined_call_operand.<no memory space> [shape: f32[1], index: 0, kind: input, shape index: {}, may-alias: {0,1}]   ;;  %s55_s1 = inlined_call_operand.hbm [shape: f32[1], index: 1, kind: output, shape index: {}, may-alias: {0,1}]  }
   0x1   :  { %12 = sst [smem:[#allocation3]] %s54_s0 }
   0x2   :  { %20 = dma.smem_to_hbm %s37_s8, 16, %s55_s1, [#allocation4]  }
   0x3   :  { %35 = dma.done.wait [#allocation4], 16  }
   0x4   :  { %36 = vsyncadd [#allocation4], 4294967280 }
   0x5   :  { %24 = sfence }
   0x6   :  { %25 = vsyncpa [#allocation4], 1 }

</bundles_post_ra>
